<compile_context>
chip_gen: v6e
topology: v6e:2x2x1
jax: 0.10.0
libtpu: 0.0.40
codegen_flags: <defaults>
</compile_context>

<pallas_src>
import functools
import math

import jax
import jax.numpy as jnp
from jax.experimental import pallas as pl
from jax.experimental.pallas import tpu as pltpu


# ---------------------------------------------------------------------------
# Kernel 1: fused phi/g projection (hoisted out of the flash (q, k) loop).
# ---------------------------------------------------------------------------
def _project_kv_kernel(xr_ref, wpg_ref, bpg_ref, kv_ref):
    """One (batch, k-block) step: kv[:2Cr] = wpg @ x_ref + bpg ; kv[2Cr] = 1.

    xr_ref : (1, C, TK)      bf16   reference features (key/value source)
    wpg_ref: (2Cr, C)        bf16   fused [phi; g] 1x1-conv weight
    bpg_ref: (2Cr, 1)        f32    fused bias
    kv_ref : (1, 2Cr+1, TK)  bf16   [phi rows; g rows; ones row (row-sum trick)]
    """
    pg = jnp.dot(wpg_ref[...], xr_ref[0],
                 preferred_element_type=jnp.float32) + bpg_ref[...]     # (2Cr, TK) f32
    ones = jnp.ones((1, pg.shape[1]), jnp.float32)
    kv_ref[0] = jnp.concatenate([pg, ones], axis=0).astype(jnp.bfloat16)


# ---------------------------------------------------------------------------
# Kernel 2: flash-style attention + conv_out + residual.
# ---------------------------------------------------------------------------
def _nonlocal_flash_kernel(x_ref, kv_ref, wt_ref, bt_ref, wo_ref, bo_ref,
                           o_ref,
                           theta_scr, m_scr, acc_scr,
                           *, cr, tk, hw, mask_keys, exp_bf16):
    """One (batch, q-block, k-block) grid step.

    Layouts (channels on sublanes, spatial positions on lanes):
      x_ref  : (1, C, TQ)      f32   query features (also the f32 residual)
      kv_ref : (1, 2Cr+1, TK)  bf16  projected keys/values [phi; g; ones]
      wt_ref : (Cr, C)         bf16  theta weight (1/sqrt(Cr) folded in)
      bt_ref : (Cr, 1)         f32   theta bias   (1/sqrt(Cr) folded in)
      wo_ref : (C, Cr)         bf16  conv_out weight,  bo_ref: (C, 1) f32
      o_ref  : (1, C, TQ)      out_dtype
    Scratch (persists across the key-block axis):
      theta_scr (TQ, Cr)   bf16
      m_scr     (TQ, 1)    f32   running max
      acc_scr   (TQ, Cr+1) f32   output accumulator; last column = running sum
    """
    ki = pl.program_id(2)
    nk = pl.num_programs(2)

    @pl.when(ki == 0)
    def _init():
        m_scr[...] = jnp.full_like(m_scr, -1e30)
        acc_scr[...] = jnp.zeros_like(acc_scr)
        # theta projection for this query block (computed once per q block).
        x_bf = x_ref[0].astype(jnp.bfloat16)                              # (C, TQ)
        th = jnp.dot(wt_ref[...], x_bf,
                     preferred_element_type=jnp.float32) + bt_ref[...]    # (Cr, TQ) f32
        theta_scr[...] = th.T.astype(jnp.bfloat16)                        # (TQ, Cr) bf16

    kv = kv_ref[0]                      # (2Cr+1, TK) bf16
    phi = kv[:cr]                       # (Cr, TK)
    g_ext = kv[cr:]                     # (Cr+1, TK): g rows + ones row

    # Scores (TQ, TK); use_scale factor already folded into theta.
    s = jnp.dot(theta_scr[...], phi, preferred_element_type=jnp.float32)

    if mask_keys:
        col = jax.lax.broadcasted_iota(jnp.int32, (1, tk), 1) + ki * tk
        s = jnp.where(col < hw, s, -1e30)

    # Online softmax over the key axis (statistics kept in f32).
    m_prev = m_scr[...]
    m_new = jnp.maximum(m_prev, jnp.max(s, axis=-1, keepdims=True))       # (TQ, 1)
    alpha = jnp.exp(m_prev - m_new)                                       # f32, tiny
    z = s - m_new                                                         # f32
    if exp_bf16:
        p = jnp.exp(z.astype(jnp.bfloat16))        # bf16 EUP path (v6e / v7x)
    else:
        p = jnp.exp(z).astype(jnp.bfloat16)        # f32 EUP (v5e), cast for MXU

    # PV matmul in A @ B^T orientation; ones row folds the row-sum into the MXU:
    # (TQ, TK) x (Cr+1, TK) -> (TQ, Cr+1), last column == sum_k p.
    pv = jax.lax.dot_general(p, g_ext,
                             dimension_numbers=(((1,), (1,)), ((), ())),
                             preferred_element_type=jnp.float32)
    acc_scr[...] = alpha * acc_scr[...] + pv
    m_scr[...] = m_new

    @pl.when(ki == nk - 1)
    def _finalize():
        acc = acc_scr[...]
        l = acc[:, cr:]                                   # (TQ, 1) softmax denom
        y = (acc[:, :cr] / l).astype(jnp.bfloat16)        # (TQ, Cr), exact recip
        # conv_out in A @ B^T orientation: (C, Cr) x (TQ, Cr) -> (C, TQ).
        out = jax.lax.dot_general(wo_ref[...], y,
                                  dimension_numbers=(((1,), (1,)), ((), ())),
                                  preferred_element_type=jnp.float32)
        out = out + bo_ref[...] + x_ref[0]                # exact f32 residual
        o_ref[0] = out.astype(o_ref.dtype)


# ---------------------------------------------------------------------------
# Wrapper helpers.
# ---------------------------------------------------------------------------
def _tpu_vmem_capacity_bytes():
    try:
        return int(pltpu.get_tpu_info().vmem_capacity_bytes)
    except Exception:
        return 64 << 20     # conservative (v7x-sized) fallback


def _device_kind():
    try:
        return jax.devices()[0].device_kind.lower()
    except Exception:
        return ""


def _pick_tile(total, target):
    """Largest multiple of 128 that divides `total` (a multiple of 128), <= target."""
    t = min(total, max(128, (target // 128) * 128))
    while total % t:
        t -= 128
    return t


def _vmem_limit(working_set_bytes, cap_bytes):
    return int(min(max(working_set_bytes + (8 << 20), 32 << 20), (cap_bytes * 3) // 4))


# ---------------------------------------------------------------------------
# Forward pass.
# ---------------------------------------------------------------------------
def nonlocal2d_forward(x_nchw, xref_nchw, params, *, tq=None, tk=None,
                       exp_bf16=None, out_dtype=jnp.float32):
    """x_nchw, xref_nchw: (N, C, H, W) float32. Returns (N, C, H, W) out_dtype."""
    n, c, h, w = x_nchw.shape
    hw = h * w
    cr = params["wt"].shape[0]

    # --- generation-aware sizing -------------------------------------------
    vmem_cap = _tpu_vmem_capacity_bytes()
    kind = _device_kind()
    if exp_bf16 is None:
        # bf16 EUP exists on v6e / v7x; not on v5e and older.
        exp_bf16 = not any(v in kind for v in ("v2", "v3", "v4", "v5"))
    big_vmem = vmem_cap >= (100 << 20)          # v5e / v6e: 128 MiB, v7x: 64 MiB
    if tq is None:
        tq = 512 if big_vmem else 256
    if tk is None:
        tk = 1024 if big_vmem else 512

    # --- layout: NCHW -> (N, C, HW) (free reshape), pad HW to lane multiple --
    hw_pad = ((hw + 127) // 128) * 128
    tq = _pick_tile(hw_pad, tq)
    tk = _pick_tile(hw_pad, tk)
    nq, nk = hw_pad // tq, hw_pad // tk
    mask_keys = hw_pad != hw

    x_flat = x_nchw.reshape(n, c, hw).astype(jnp.float32)      # f32: exact residual
    xr_flat = xref_nchw.reshape(n, c, hw).astype(jnp.bfloat16)
    if mask_keys:
        pad = hw_pad - hw
        x_flat = jnp.pad(x_flat, ((0, 0), (0, 0), (0, pad)))
        xr_flat = jnp.pad(xr_flat, ((0, 0), (0, 0), (0, pad)))

    # --- weight prep: fold use_scale into theta, fuse phi+g ------------------
    scale = 1.0 / math.sqrt(cr)
    wt = (params["wt"] * scale).astype(jnp.bfloat16)                           # (Cr, C)
    bt = (params["bt"] * scale).reshape(cr, 1).astype(jnp.float32)
    wpg = jnp.concatenate([params["wp"], params["wg"]], axis=0).astype(jnp.bfloat16)  # (2Cr, C)
    bpg = jnp.concatenate([params["bp"], params["bg"]], axis=0).reshape(2 * cr, 1).astype(jnp.float32)
    wo = params["wo"].astype(jnp.bfloat16)                                     # (C, Cr)
    bo = params["bo"].reshape(c, 1).astype(jnp.float32)

    kv_rows = 2 * cr + 1
    out_isz = jnp.dtype(out_dtype).itemsize

    # ======================================================================
    # Pass 1: project x_ref once per batch -> kv = [phi; g; ones]  (bf16).
    # ======================================================================
    ws_p = (2 * c * tk * 2                       # xr blocks (double-buffered)
            + 2 * kv_rows * tk * 2               # kv out blocks
            + 2 * (2 * cr * c * 2 + 2 * cr * 4)  # weights + bias (2x buffering)
            + 3 * kv_rows * tk * 4)              # live f32 intermediates
    cost_p = pl.CostEstimate(
        flops=int(2 * n * hw_pad * (2 * cr) * c),
        transcendentals=0,
        bytes_accessed=int(n * c * hw_pad * 2 + n * kv_rows * hw_pad * 2
                           + 2 * cr * c * 2))

    kv = pl.pallas_call(
        _project_kv_kernel,
        out_shape=jax.ShapeDtypeStruct((n, kv_rows, hw_pad), jnp.bfloat16),
        grid_spec=pltpu.PrefetchScalarGridSpec(
            num_scalar_prefetch=0,
            grid=(n, nk),
            in_specs=[
                pl.BlockSpec((1, c, tk), lambda b, k: (b, 0, k)),
                pl.BlockSpec((2 * cr, c), lambda b, k: (0, 0)),
                pl.BlockSpec((2 * cr, 1), lambda b, k: (0, 0)),
            ],
            out_specs=pl.BlockSpec((1, kv_rows, tk), lambda b, k: (b, 0, k)),
        ),
        compiler_params=pltpu.CompilerParams(
            dimension_semantics=("parallel", "parallel"),
            vmem_limit_bytes=_vmem_limit(ws_p, vmem_cap)),
        cost_estimate=cost_p,
    )(xr_flat, wpg, bpg)

    # ======================================================================
    # Pass 2: flash attention + conv_out + residual.
    # ======================================================================
    ws_f = (2 * c * tq * 4                       # x blocks (f32, double-buffered)
            + 2 * kv_rows * tk * 2               # kv blocks
            + 2 * c * tq * out_isz               # out blocks
            + 2 * (3 * cr * c * 2 + (3 * cr + 2 * c) * 4)    # weights + biases (2x)
            + tq * max(cr, 128) * 2              # theta scratch (bf16, lane-padded)
            + tq * 128 * 4                       # m scratch (lane-padded)
            + tq * max(cr + 1, 128) * 4          # acc scratch
            + 4 * tq * tk * 4)                   # live (TQ, TK) temporaries
    flops = 2 * n * (hw_pad * c * cr                    # theta
                     + hw_pad * hw_pad * cr             # scores
                     + hw_pad * hw_pad * (cr + 1)       # PV (+ folded row-sum)
                     + hw_pad * cr * c)                 # conv_out
    cost_f = pl.CostEstimate(
        flops=int(flops),
        transcendentals=int(n * hw_pad * hw_pad),
        bytes_accessed=int(n * c * hw_pad * 4
                           + nq * n * kv_rows * hw_pad * 2
                           + n * c * hw_pad * out_isz
                           + 3 * cr * c * 2))

    kernel = functools.partial(_nonlocal_flash_kernel, cr=cr, tk=tk, hw=hw,
                               mask_keys=mask_keys, exp_bf16=bool(exp_bf16))

    out_flat = pl.pallas_call(
        kernel,
        out_shape=jax.ShapeDtypeStruct((n, c, hw_pad), out_dtype),
        grid_spec=pltpu.PrefetchScalarGridSpec(
            num_scalar_prefetch=0,
            grid=(n, nq, nk),
            in_specs=[
                pl.BlockSpec((1, c, tq), lambda b, qi, ki: (b, 0, qi)),        # x (query + residual)
                pl.BlockSpec((1, kv_rows, tk), lambda b, qi, ki: (b, 0, ki)),  # kv (keys/values)
                pl.BlockSpec((cr, c), lambda b, qi, ki: (0, 0)),               # theta weight
                pl.BlockSpec((cr, 1), lambda b, qi, ki: (0, 0)),               # theta bias
                pl.BlockSpec((c, cr), lambda b, qi, ki: (0, 0)),               # conv_out weight
                pl.BlockSpec((c, 1), lambda b, qi, ki: (0, 0)),                # conv_out bias
            ],
            out_specs=pl.BlockSpec((1, c, tq), lambda b, qi, ki: (b, 0, qi)),
            scratch_shapes=[
                pltpu.VMEM((tq, cr), jnp.bfloat16),       # theta (bf16, per q block)
                pltpu.VMEM((tq, 1), jnp.float32),         # running max
                pltpu.VMEM((tq, cr + 1), jnp.float32),    # accumulator (+ row-sum col)
            ],
        ),
        compiler_params=pltpu.CompilerParams(
            dimension_semantics=("parallel", "parallel", "arbitrary"),
            vmem_limit_bytes=_vmem_limit(ws_f, vmem_cap)),
        cost_estimate=cost_f,
    )(x_flat, kv, wt, bt, wo, bo)

    # (N, C, HW_pad) -> drop padding -> NCHW (free reshape).
    return out_flat[:, :, :hw].reshape(n, c, h, w)


# ---------------------------------------------------------------------------
# Pure-JAX f32 reference mirroring the PyTorch forward (embedded_gaussian).
# ---------------------------------------------------------------------------
def _reference_forward(x_nchw, xref_nchw, params):
    n, c, h, w = x_nchw.shape
    hw = h * w
    x_flat = jnp.transpose(x_nchw.reshape(n, c, hw), (0, 2, 1))    # (N, HW, C)
    xr_flat = jnp.transpose(xref_nchw.reshape(n, c, hw), (0, 2, 1))

    g_x = xr_flat @ params["wg"].T + params["bg"]                  # (N, HW, Cr)
    theta_x = x_flat @ params["wt"].T + params["bt"]
    phi_x = xr_flat @ params["wp"].T + params["bp"]

    cr = theta_x.shape[-1]
    pw = jnp.einsum("nqc,nkc->nqk", theta_x, phi_x) / jnp.sqrt(jnp.float32(cr))
    pw = jax.nn.softmax(pw, axis=-1)
    y = jnp.einsum("nqk,nkc->nqc", pw, g_x)
    out_flat = x_flat + y @ params["wo"].T + params["bo"]
    return jnp.transpose(out_flat, (0, 2, 1)).reshape(n, c, h, w)


def _make_params(key, in_channels, reduction=2, std=0.01):
    """Weights in PyTorch conv layout: (C_out, C_in). Biases zero (mmcv normal_init).

    conv_out uses the zeros_init=False path (normal std) so the attention path is
    actually exercised; the default zeros_init=True would make output == x.
    """
    inter = in_channels // reduction
    k = jax.random.split(key, 4)
    return {
        "wg": std * jax.random.normal(k[0], (inter, in_channels), jnp.float32),
        "bg": jnp.zeros((inter,), jnp.float32),
        "wt": std * jax.random.normal(k[1], (inter, in_channels), jnp.float32),
        "bt": jnp.zeros((inter,), jnp.float32),
        "wp": std * jax.random.normal(k[2], (inter, in_channels), jnp.float32),
        "bp": jnp.zeros((inter,), jnp.float32),
        "wo": std * jax.random.normal(k[3], (in_channels, inter), jnp.float32),
        "bo": jnp.zeros((in_channels,), jnp.float32),
    }


if __name__ == "__main__":
    key = jax.random.PRNGKey(0)
    kx, kr, kp = jax.random.split(key, 3)

    N, C, H, W = 2, 16, 8, 8          # in_channels=16, reduction=2 -> Cr=8, HW=64 (padded to 128)
    x = jax.random.normal(kx, (N, C, H, W), jnp.float32)
    x_ref = jax.random.normal(kr, (N, C, H, W), jnp.float32)
    params = _make_params(kp, C, reduction=2)

    out = nonlocal2d_forward(x, x_ref, params)
    out = jax.block_until_ready(out)

    ref = _reference_forward(x, x_ref, params)
    assert out.shape == (N, C, H, W)
    # bf16 MXU operands (and bf16 exp on v6e/v7x) => small deviations vs f32 reference.
    assert jnp.allclose(out, ref, atol=3e-2, rtol=3e-2), "mismatch vs JAX reference"

    print("KERNEL_OK")
</pallas_src>

<mosaic_0001>
module attributes {stable_mosaic.version = 11 : i64} {
  func.func @_project_kv_kernel(%arg0: i32, %arg1: i32, %arg2: memref<1x16x128xbf16, #tpu.memory_space<vmem>>, %arg3: memref<16x16xbf16, #tpu.memory_space<vmem>>, %arg4: memref<16x1xf32, #tpu.memory_space<vmem>>, %arg5: memref<1x17x128xbf16, #tpu.memory_space<vmem>>) attributes {dimension_semantics = [#tpu.dimension_semantics<parallel>, #tpu.dimension_semantics<parallel>], iteration_bounds = array<i64: 2, 1>, scalar_prefetch = 0 : i64, scratch_operands = 0 : i64, tpu.core_type = #tpu.core_type<tc>, window_params = [{transform_indices = @transform_0, window_bounds = array<i64: 1, 16, 128>}, {pipeline_mode = #tpu.pipeline_mode<synchronous>, transform_indices = @transform_1, window_bounds = array<i64: 16, 16>}, {pipeline_mode = #tpu.pipeline_mode<synchronous>, transform_indices = @transform_2, window_bounds = array<i64: 16, 1>}, {transform_indices = @transform_3, window_bounds = array<i64: 1, 17, 128>}]} {
    %c0 = arith.constant 0 : index
    %c0_0 = arith.constant 0 : index
    %0 = vector.load %arg3[%c0, %c0_0] : memref<16x16xbf16, #tpu.memory_space<vmem>>, vector<16x16xbf16>
    %c0_1 = arith.constant 0 : index
    %c0_2 = arith.constant 0 : index
    %c0_3 = arith.constant 0 : index
    %1 = vector.load %arg2[%c0_1, %c0_2, %c0_3] : memref<1x16x128xbf16, #tpu.memory_space<vmem>>, vector<1x16x128xbf16>
    %2 = vector.shape_cast %1 : vector<1x16x128xbf16> to vector<16x128xbf16>
    %cst = arith.constant dense<0.000000e+00> : vector<16x128xf32>
    %3 = tpu.matmul %0, %2, %cst {dimension_numbers = #tpu.dot_dimension_numbers<[1], [0], [0], [1], [0, 0, 1, 1], [], []>} : vector<16x16xbf16>, vector<16x128xbf16>, vector<16x128xf32> -> vector<16x128xf32>
    %c0_4 = arith.constant 0 : index
    %c0_5 = arith.constant 0 : index
    %4 = vector.load %arg4[%c0_4, %c0_5] : memref<16x1xf32, #tpu.memory_space<vmem>>, vector<16x1xf32>
    %5 = vector.broadcast %4 : vector<16x1xf32> to vector<16x128xf32>
    %6 = arith.addf %3, %5 : vector<16x128xf32>
    %cst_6 = arith.constant 1.000000e+00 : f32
    %7 = vector.broadcast %cst_6 : f32 to vector<1x128xf32>
    %8 = tpu.concatenate %6, %7 in 0 : vector<16x128xf32>, vector<1x128xf32> -> vector<17x128xf32>
    %9 = arith.truncf %8 : vector<17x128xf32> to vector<17x128xbf16>
    %c0_7 = arith.constant 0 : index
    %c0_8 = arith.constant 0 : index
    %c0_9 = arith.constant 0 : index
    %10 = vector.load %arg5[%c0_7, %c0_8, %c0_9] : memref<1x17x128xbf16, #tpu.memory_space<vmem>>, vector<1x17x128xbf16>
    %11 = vector.shape_cast %10 : vector<1x17x128xbf16> to vector<17x128xbf16>
    %12 = vector.shape_cast %9 : vector<17x128xbf16> to vector<1x17x128xbf16>
    tpu.vector_store %arg5[%c0_7, %c0_8, %c0_9], %12 {strides = array<i32>} : memref<1x17x128xbf16, #tpu.memory_space<vmem>>, vector<1x17x128xbf16>,
    return
  }
  func.func @transform_0(%arg0: i32, %arg1: i32) -> (i32, i32, i32) {
    %c0_i32 = arith.constant 0 : i32
    %c0_i32_0 = arith.constant 0 : i32
    return %arg0, %c0_i32, %arg1 : i32, i32, i32
  }
  func.func @transform_1(%arg0: i32, %arg1: i32) -> (i32, i32) {
    %c0_i32 = arith.constant 0 : i32
    %c0_i32_0 = arith.constant 0 : i32
    %c0_i32_1 = arith.constant 0 : i32
    return %c0_i32, %c0_i32_0 : i32, i32
  }
  func.func @transform_2(%arg0: i32, %arg1: i32) -> (i32, i32) {
    %c0_i32 = arith.constant 0 : i32
    %c0_i32_0 = arith.constant 0 : i32
    %c0_i32_1 = arith.constant 0 : i32
    return %c0_i32, %c0_i32_0 : i32, i32
  }
  func.func @transform_3(%arg0: i32, %arg1: i32) -> (i32, i32, i32) {
    %c0_i32 = arith.constant 0 : i32
    %c0_i32_0 = arith.constant 0 : i32
    return %arg0, %c0_i32, %arg1 : i32, i32, i32
  }
}

</mosaic_0001>

<bundles_post_ra>
// kernel: tpu_custom_call.1
= control target key start
LH: loop header
LB: loop body
LE: loop exit
PB: predicated region body
PF: predicated region fallthrough
CT: control target
= control target key end

     0   :  { %8 = vsyncpa [#allocation3], 0  ;;  %s567_s12 = smov 0   ;;  %s569_s13 = smov 0   ;;  %s632_s0 = inlined_call_operand.vmem [shape: bf16[2,16,128], index: 0, kind: input, shape index: {}]   ;;  %s633_s1 = inlined_call_operand.hbm [shape: bf16[16,16], index: 1, kind: input, shape index: {}]   ;;  %s634_s2 = inlined_call_operand.vmem [shape: f32[16,1], index: 2, kind: input, shape index: {}]   ;;  %s635_s3 = inlined_call_operand.vmem [shape: bf16[2,17,128], index: 3, kind: output, shape index: {}]  }
   0x1   :  { %s571_s14 = smov 0  }
   0x2 LB: > { %s407_s15 = sadd.s32 4294967295, %s538_s14   ;;  %s26_s16 = sadd.s32 1, %s534_s13  ;;  %s538_s14 = sphi %s571_s14, %s14_s14   ;;  %s534_s13 = sphi %s569_s13, %s639_s13   ;;  %s530_s12 = sphi %s567_s12, %s638_s12  }
   0x3   : > { %p28_p0 = scmp.ge.s32.totalorder %s26_s16, 2  ;;  %p409_p1 = scmp.ge.s32.totalorder %s538_s14, 1 }
   0x4   : > { %p129_p2 = scmp.lt.s32.totalorder %s538_s14, 3  ;;  %p592_p4 = scmp.eq.s32.totalorder %s407_s15, 0 }
   0x5   : > { %s641_s16 = smov (%p28_p0, %s26_s16), 0  ;;  %s540_s19 = smov [#allocation2]  }
   0x6   : > { %p588_p3 = pnand %p409_p1, %p129_p2  ;;  %s141_s20 = sshll.u32 %s540_s19, 4  ;;  %s142_s20 = int_to_ptr.vmem [resolvable:$true] %s141_s20 }
   0x7   : > { %s497_s21 = scalar_lea.vmem %s142_s20, 128  ;;  %p505_p11 = scmp.lt.s32.totalorder %s142_s20, %s142_s20 }
   0x8   : > { %p446_p5 = pneg %p588_p3  ;;  %p498_p8 = scmp.ne.s32.totalorder %s142_s20, %s497_s21 }
   0x9   : > { %p506_p12 = scmp.lt.s32.totalorder %s497_s21, %s497_s21 }
   0xa   : > { %p447_p6 = pnand %p592_p4, %p446_p5 }
   0xb   : > { %p507_p13 = por %p506_p12, %p505_p11 }
   0xc   : > { %p488_p7 = pneg %p447_p6 }
   0xe   : > { %p500_p9 = pnand %p498_p8, %p488_p7 }
  0x10   : > { %p501_p10 = pneg %p500_p9 }
  0x12   : > { %p508_p0 = pnand %p507_p13, %p501_p10 }
  0x14   : > { %511 = shalt.err (!%p508_p0)
}
  0x15   : > { %s541_s22 = smov 64   ;;  %s542_s23 = smov 4  }
  0x16   : > { %449 = dma.hbm_to_vmem [thread:$0]  (!%p447_p6), %s633_s1, 128, %s142_s20, [#allocation3], %s541_s22, %s541_s22, %s542_s23  }
  0x17   : > { %171 = sbr.rel (%p588_p3) target bundleno = 240 (0xf0), region = 32 }
  0x1c   : > { %525 = dma.done.wait (%p592_p4), [#allocation3], 128  }
  0x1d   : > { %527 = vsyncadd (%p592_p4), [#allocation3], 4294967168  ;;  %p201_p1 = scmp.lt.s32.totalorder %s530_s12, 1  ;;  %v543_v0 = vmov 0.0   ;;  %vm544_vm0 = vmmov 0   ;;  %vm305_vm1 = vcmask 1040384  }
  0x1e   : > { %435 = vmatprep.subr.bf16.mxu0 %v543_v0  ;;  %437 = vmatprep.mubr.msk.bf16.mxu0 %vm544_vm0, %v543_v0  ;;  %vm306_vm2 = vsmask.f32 256  ;;  %v545_v1 = vmov 0   ;;  %v546_v2 = vmov 1.0|1.0   ;;  %v485_v7 = vld [vmem:[#allocation2] sm:$0xff]  }
  0x1f   : > { %s643_s12 = smov (!%p201_p1, %s530_s12), 1  ;;  %483 = vset.pattern.permute.xlu0 %v545_v1  ;;  %v422_v3 = vcombine.low %v546_v2, %v546_v2  ;;  %vm307_vm3 = vmand %vm305_vm1, %vm306_vm2  ;;  %vm245_vm4 = vcmask 130048   ;;  %v222_v8 = vld [vmem:[%s634_s2] sm:$0xff]  ;;  %v223_v9 = vld [vmem:[%s634_s2 + $0x8] sm:$0xff] }
  0x20   : > { %s425_s26 = sshll.u32 %s643_s12, 3  ;;  %s441_s27 = smul.u32 12, %s643_s12  ;;  %226 = vperm.xlu0 %483, %v222_v8  }
  0x21   : > { %s208_s30 = scalar_lea.vmem %s632_s0, %s425_s26 }
  0x22   : > { %s216_s6 = scalar_lea.vmem %s635_s3, %s441_s27  ;;  %v484_v4 = vld [vmem:[%s208_s30] sm:$0xff]  }
  0x23   : > { %v308_v5 = vld [vmem:[%s216_s6 + $0x8] sm:$0x1]  ;;  %436 = vmatpush3.bf16.msra.mxu0 %v484_v4 }
  0x24   : > { %v309_v6 = vsel %vm307_vm3, %v422_v3, %v308_v5  ;;  %231 = vperm.xlu0 %483, %v223_v9  }
  0x25   : > { %310 = vst [vmem:[%s216_s6 + $0x8] sm:$0x1] %v309_v6 }
  0x26   : > { %438 = vmatmul.mubr.msk.bf16.vlgmr.msra.gmra.mxu0 %vm245_vm4, %v485_v7 }
  0x9b   : > { %v227_v10 = vpop.permute.xlu0 %226 }
  0x9f   : > { %v232_v13 = vpop.permute.xlu0 %231 }
  0xe6   : > { %v283_v11 = vpop.f32.mrf.mxu0 }
  0xe7   : > { %v284_v15 = vadd.f32 %v283_v11, %v227_v10 }
  0xe8   : > { %v439_v12 = vpop.f32.mrf.mxu0 }
  0xea   : > { %v286_v14 = vpop.f32.mrf.mxu0 }
  0xeb   : > { %v287_v16 = vadd.f32 %v286_v14, %v232_v13 }
  0xec   : > { %v440_v17 = vpop.f32.mrf.mxu0 }
  0xed   : > { %v431_v18 = vpack.c.bf16 %v287_v16, %v284_v15 }
  0xef   : > { %432 = vst [vmem:[%s216_s6] sm:$0xff] %v431_v18  }
  0xf0 PF: > { %s14_s14 = sadd.s32 1, %s538_s14   ;;  %s638_s12 = smov %s534_s13 }
  0xf1   : > { %p11_p2 = scmp.ge.s32.totalorder %s14_s14, 4   ;;  %s639_s13 = smov %s641_s16 }
  0xf3   :  { %13 = sbr.rel (!%p11_p2) target bundleno = 2 (0x2), region = 67 }
  0xf8   :  { %338 = vsyncpa [#allocation3], 1 }
  0xf9   :  { %340 = vsyncpa [#allocation3 + $0x1], 1 }

</bundles_post_ra>
